<compile_context>
chip_gen: v7x
topology: tpu7x:2x2x1
jax: 0.10.0
libtpu: 0.0.40
codegen_flags: <defaults>
</compile_context>

<pallas_src>
import jax
import jax.numpy as jnp
from jax.experimental import pallas as pl
from jax.experimental.pallas import tpu as pltpu

# ----------------------- model hyper-parameters ---------------------------
EMBEDDING_DIM = 50
NEURONS = (100, 200, 100)
N_CLASSES = 2
BN_EPS = 1e-5
LANE = 128


def _round_up(x, m):
    return (x + m - 1) // m * m


# ------------------------------ Pallas kernel -----------------------------
def mlp_kernel(ids_ref,
               wt1_ref, b1_ref,
               w2_ref, b2_ref,
               w3_ref, b3_ref,
               w4_ref, b4_ref,
               out_ref):
    """One batch tile: fused embedding gather (one-hot matmul) + 4 dense layers."""
    ids = ids_ref[...]                                   # (BM, L) int32
    bm = ids.shape[0]
    n_pos, v_pad, _ = wt1_ref.shape

    lane_ids = jax.lax.broadcasted_iota(jnp.int32, (bm, v_pad), 1)

    # Layer 1:  x @ W1 + b1  with  x = flatten(emb[ids]), expressed as
    #   sum_l onehot(ids[:, l]) @ (emb @ W1_block_l)   -- MXU-only, no gather.
    acc = jnp.zeros((bm, b1_ref.shape[-1]), jnp.float32)
    for l in range(n_pos):                               # static, L is small
        onehot = jnp.where(lane_ids == ids[:, l:l + 1], 1.0, 0.0).astype(jnp.bfloat16)
        acc = acc + jnp.dot(onehot, wt1_ref[l],
                            preferred_element_type=jnp.float32)
    h = jnp.maximum(acc + b1_ref[...], 0.0).astype(jnp.bfloat16)

    # Layers 2..3: Linear -> ReLU (eval-BN already folded into W/b; Dropout = id).
    h = jnp.dot(h, w2_ref[...], preferred_element_type=jnp.float32) + b2_ref[...]
    h = jnp.maximum(h, 0.0).astype(jnp.bfloat16)
    h = jnp.dot(h, w3_ref[...], preferred_element_type=jnp.float32) + b3_ref[...]
    h = jnp.maximum(h, 0.0).astype(jnp.bfloat16)

    # Final classifier; output padded to a full lane width -> unmasked stores.
    out_ref[...] = (jnp.dot(h, w4_ref[...], preferred_element_type=jnp.float32)
                    + b4_ref[...])


# ------------------------------ wrapper ------------------------------------
@jax.jit
def mlp_forward(token_ids, kparams):
    """token_ids: (B, L) int32; kparams: folded/padded kernel params. -> (B, 2) f32."""
    B, L = token_ids.shape
    wt1, b1 = kparams["wt1"], kparams["b1"]
    w2, b2 = kparams["w2"], kparams["b2"]
    w3, b3 = kparams["w3"], kparams["b3"]
    w4, b4 = kparams["w4"], kparams["b4"]
    out_pad = w4.shape[1]

    # Batch tile: 256 rows keeps the MXU M-dim full on v6e/v7x and fits easily in
    # v7x's smaller VMEM; tiny batches just round up to the 8-sublane granule.
    block_m = 256 if B >= 256 else _round_up(B, 8)
    b_pad = _round_up(B, block_m)
    if b_pad != B:
        token_ids = jnp.pad(token_ids, ((0, b_pad - B), (0, 0)))

    const2 = lambda i: (0, 0)
    in_specs = [
        pl.BlockSpec((block_m, L), lambda i: (i, 0)),    # batch-tiled ids
        pl.BlockSpec(wt1.shape, lambda i: (0, 0, 0)),    # weights: VMEM-resident
        pl.BlockSpec(b1.shape, const2),
        pl.BlockSpec(w2.shape, const2),
        pl.BlockSpec(b2.shape, const2),
        pl.BlockSpec(w3.shape, const2),
        pl.BlockSpec(b3.shape, const2),
        pl.BlockSpec(w4.shape, const2),
        pl.BlockSpec(b4.shape, const2),
    ]
    out = pl.pallas_call(
        mlp_kernel,
        out_shape=jax.ShapeDtypeStruct((b_pad, out_pad), jnp.float32),
        grid=(b_pad // block_m,),
        in_specs=in_specs,
        out_specs=pl.BlockSpec((block_m, out_pad), lambda i: (i, 0)),
        compiler_params=pltpu.CompilerParams(
            dimension_semantics=("parallel",)),
    )(token_ids, wt1, b1, w2, b2, w3, b3, w4, b4)
    return out[:B, :N_CLASSES]


# --------------------- deterministic parameter setup ----------------------
def init_params(key, vocab_size, msl):
    """PyTorch-like raw parameters (weights (in,out), eval-BN folded to scale/shift)."""
    dims = (msl * EMBEDDING_DIM, *NEURONS)
    keys = jax.random.split(key, 32)
    ki = iter(range(32))

    params = {}
    params["embedding"] = (
        0.1 * jax.random.normal(keys[next(ki)], (vocab_size + 2, EMBEDDING_DIM),
                                jnp.float32))

    for li in range(3):
        fan_in, fan_out = dims[li], dims[li + 1]
        w = 0.05 * jax.random.normal(keys[next(ki)], (fan_in, fan_out), jnp.float32)
        b = 0.05 * jax.random.normal(keys[next(ki)], (1, fan_out), jnp.float32)
        gamma = 1.0 + 0.1 * jax.random.normal(keys[next(ki)], (1, fan_out), jnp.float32)
        beta = 0.1 * jax.random.normal(keys[next(ki)], (1, fan_out), jnp.float32)
        run_mean = 0.1 * jax.random.normal(keys[next(ki)], (1, fan_out), jnp.float32)
        run_var = jnp.abs(
            1.0 + 0.1 * jax.random.normal(keys[next(ki)], (1, fan_out), jnp.float32))
        scale = gamma / jnp.sqrt(run_var + BN_EPS)       # eval-mode BN affine
        shift = beta - run_mean * scale
        params[f"w{li + 1}"] = w
        params[f"b{li + 1}"] = b
        params[f"s{li + 1}"] = scale
        params[f"t{li + 1}"] = shift

    params["w4"] = 0.05 * jax.random.normal(keys[next(ki)], (NEURONS[-1], N_CLASSES),
                                            jnp.float32)
    params["b4"] = 0.05 * jax.random.normal(keys[next(ki)], (1, N_CLASSES), jnp.float32)
    return params


def prepare_kernel_params(params, msl):
    """One-time parameter glue: fold embedding into layer 1, fold eval-BN into the
    next layer, zero-pad to lane multiples, cast matmul operands to bf16."""
    E = EMBEDDING_DIM
    emb = params["embedding"]                            # (V, E)
    V = emb.shape[0]
    H1, H2, H3 = NEURONS

    w1, b1 = params["w1"], params["b1"]
    w2, b2 = params["w2"], params["b2"]
    w3, b3 = params["w3"], params["b3"]
    w4, b4 = params["w4"], params["b4"]
    s1, t1 = params["s1"], params["t1"]
    s2, t2 = params["s2"], params["t2"]
    s3, t3 = params["s3"], params["t3"]

    # BN(eval) fold:  (relu(z)*s + t) @ W + b  ==  relu(z) @ (diag(s)W) + (b + t@W)
    w2f, b2f = s1.reshape(-1, 1) * w2, b2 + t1 @ w2
    w3f, b3f = s2.reshape(-1, 1) * w3, b3 + t2 @ w3
    w4f, b4f = s3.reshape(-1, 1) * w4, b4 + t3 @ w4

    # Embedding fold:  WT1[l] = emb @ W1[l*E:(l+1)*E, :]   -> (L, V, H1)
    wt1 = jnp.einsum("ve,leh->lvh", emb, w1.reshape(msl, E, H1))

    vp = _round_up(V, LANE)
    h1p, h2p, h3p = (_round_up(H1, LANE), _round_up(H2, LANE), _round_up(H3, LANE))
    op = _round_up(N_CLASSES, LANE)

    def pad2(x, r, c):
        return jnp.pad(x, ((0, r - x.shape[0]), (0, c - x.shape[1])))

    return {
        "wt1": jnp.pad(wt1, ((0, 0), (0, vp - V), (0, h1p - H1))).astype(jnp.bfloat16),
        "b1": pad2(b1, 1, h1p),
        "w2": pad2(w2f, h1p, h2p).astype(jnp.bfloat16),
        "b2": pad2(b2f, 1, h2p),
        "w3": pad2(w3f, h2p, h3p).astype(jnp.bfloat16),
        "b3": pad2(b3f, 1, h3p),
        "w4": pad2(w4f, h3p, op).astype(jnp.bfloat16),
        "b4": pad2(b4f, 1, op),
    }


# ------------------------- pure-JAX reference ------------------------------
def mlp_reference(token_ids, params):
    emb = params["embedding"]
    B, L = token_ids.shape
    h = jnp.take(emb, token_ids, axis=0).reshape(B, L * emb.shape[1])
    for li in range(1, 4):
        h = jnp.maximum(h @ params[f"w{li}"] + params[f"b{li}"], 0.0)
        h = h * params[f"s{li}"] + params[f"t{li}"]      # eval BN; Dropout = id
    return h @ params["w4"] + params["b4"]


if __name__ == "__main__":
    key = jax.random.PRNGKey(0)
    k_param, k_small, k_big = jax.random.split(key, 3)

    vocab_size = 20          # small synthetic vocab
    msl = 8                  # max sequence length ("get_max_from_data")

    params = init_params(k_param, vocab_size, msl)
    kparams = prepare_kernel_params(params, msl)

    for name, k_data, batch in (("small", k_small, 4), ("tiled", k_big, 512)):
        token_ids = jax.random.randint(k_data, (batch, msl), 0, vocab_size + 2,
                                       dtype=jnp.int32)
        out = jax.block_until_ready(mlp_forward(token_ids, kparams))
        ref = mlp_reference(token_ids, params)
        assert out.shape == (batch, N_CLASSES)
        # bf16 matmul operands vs f32 reference -> loosened tolerance.
        assert jnp.allclose(out, ref, atol=2e-2, rtol=2e-2), f"mismatch ({name})"

    print("KERNEL_OK")
</pallas_src>

<mosaic_0001>
module attributes {stable_mosaic.version = 11 : i64} {
  func.func @mlp_kernel(%arg0: i32, %arg1: memref<8x8xi32, #tpu.memory_space<vmem>>, %arg2: memref<8x128x128xbf16, #tpu.memory_space<vmem>>, %arg3: memref<1x128xf32, #tpu.memory_space<vmem>>, %arg4: memref<128x256xbf16, #tpu.memory_space<vmem>>, %arg5: memref<1x256xf32, #tpu.memory_space<vmem>>, %arg6: memref<256x128xbf16, #tpu.memory_space<vmem>>, %arg7: memref<1x128xf32, #tpu.memory_space<vmem>>, %arg8: memref<128x128xbf16, #tpu.memory_space<vmem>>, %arg9: memref<1x128xf32, #tpu.memory_space<vmem>>, %arg10: memref<8x128xf32, #tpu.memory_space<vmem>>) attributes {dimension_semantics = [#tpu.dimension_semantics<parallel>], iteration_bounds = array<i64: 1>, scalar_prefetch = 0 : i64, scratch_operands = 0 : i64, tpu.core_type = #tpu.core_type<tc>, window_params = [{transform_indices = @transform_0, window_bounds = array<i64: 8, 8>}, {pipeline_mode = #tpu.pipeline_mode<synchronous>, transform_indices = @transform_1, window_bounds = array<i64: 8, 128, 128>}, {pipeline_mode = #tpu.pipeline_mode<synchronous>, transform_indices = @transform_2, window_bounds = array<i64: 1, 128>}, {pipeline_mode = #tpu.pipeline_mode<synchronous>, transform_indices = @transform_3, window_bounds = array<i64: 128, 256>}, {pipeline_mode = #tpu.pipeline_mode<synchronous>, transform_indices = @transform_4, window_bounds = array<i64: 1, 256>}, {pipeline_mode = #tpu.pipeline_mode<synchronous>, transform_indices = @transform_5, window_bounds = array<i64: 256, 128>}, {pipeline_mode = #tpu.pipeline_mode<synchronous>, transform_indices = @transform_6, window_bounds = array<i64: 1, 128>}, {pipeline_mode = #tpu.pipeline_mode<synchronous>, transform_indices = @transform_7, window_bounds = array<i64: 128, 128>}, {pipeline_mode = #tpu.pipeline_mode<synchronous>, transform_indices = @transform_8, window_bounds = array<i64: 1, 128>}, {transform_indices = @transform_9, window_bounds = array<i64: 8, 128>}]} {
    %c0 = arith.constant 0 : index
    %c0_0 = arith.constant 0 : index
    %0 = vector.load %arg1[%c0, %c0_0] : memref<8x8xi32, #tpu.memory_space<vmem>>, vector<8x8xi32>
    %1 = tpu.iota {dimensions = array<i32: 1>} : vector<8x128xi32>
    %cst = arith.constant 0.000000e+00 : f32
    %2 = vector.broadcast %cst : f32 to vector<8x128xf32>
    %3 = vector.extract_strided_slice %0 {offsets = [0, 0], sizes = [8, 1], strides = [1, 1]} : vector<8x8xi32> to vector<8x1xi32>
    %4 = vector.broadcast %3 : vector<8x1xi32> to vector<8x128xi32>
    %5 = arith.cmpi eq, %1, %4 : vector<8x128xi32>
    %cst_1 = arith.constant 1.000000e+00 : f32
    %cst_2 = arith.constant 0.000000e+00 : f32
    %6 = vector.broadcast %cst_1 : f32 to vector<8x128xf32>
    %7 = vector.broadcast %cst_2 : f32 to vector<8x128xf32>
    %8 = arith.select %5, %6, %7 : vector<8x128xi1>, vector<8x128xf32>
    %9 = arith.truncf %8 : vector<8x128xf32> to vector<8x128xbf16>
    %c0_3 = arith.constant 0 : index
    %c0_4 = arith.constant 0 : index
    %c0_5 = arith.constant 0 : index
    %10 = vector.load %arg2[%c0_3, %c0_4, %c0_5] : memref<8x128x128xbf16, #tpu.memory_space<vmem>>, vector<1x128x128xbf16>
    %11 = vector.shape_cast %10 : vector<1x128x128xbf16> to vector<128x128xbf16>
    %cst_6 = arith.constant dense<0.000000e+00> : vector<8x128xf32>
    %12 = tpu.matmul %9, %11, %cst_6 {dimension_numbers = #tpu.dot_dimension_numbers<[1], [0], [0], [1], [0, 0, 1, 1], [], []>} : vector<8x128xbf16>, vector<128x128xbf16>, vector<8x128xf32> -> vector<8x128xf32>
    %13 = arith.addf %2, %12 : vector<8x128xf32>
    %14 = vector.extract_strided_slice %0 {offsets = [0, 1], sizes = [8, 1], strides = [1, 1]} : vector<8x8xi32> to vector<8x1xi32>
    %15 = vector.broadcast %14 : vector<8x1xi32> to vector<8x128xi32>
    %16 = arith.cmpi eq, %1, %15 : vector<8x128xi32>
    %cst_7 = arith.constant 1.000000e+00 : f32
    %cst_8 = arith.constant 0.000000e+00 : f32
    %17 = vector.broadcast %cst_7 : f32 to vector<8x128xf32>
    %18 = vector.broadcast %cst_8 : f32 to vector<8x128xf32>
    %19 = arith.select %16, %17, %18 : vector<8x128xi1>, vector<8x128xf32>
    %20 = arith.truncf %19 : vector<8x128xf32> to vector<8x128xbf16>
    %c1 = arith.constant 1 : index
    %c0_9 = arith.constant 0 : index
    %c0_10 = arith.constant 0 : index
    %21 = vector.load %arg2[%c1, %c0_9, %c0_10] : memref<8x128x128xbf16, #tpu.memory_space<vmem>>, vector<1x128x128xbf16>
    %22 = vector.shape_cast %21 : vector<1x128x128xbf16> to vector<128x128xbf16>
    %cst_11 = arith.constant dense<0.000000e+00> : vector<8x128xf32>
    %23 = tpu.matmul %20, %22, %cst_11 {dimension_numbers = #tpu.dot_dimension_numbers<[1], [0], [0], [1], [0, 0, 1, 1], [], []>} : vector<8x128xbf16>, vector<128x128xbf16>, vector<8x128xf32> -> vector<8x128xf32>
    %24 = arith.addf %13, %23 : vector<8x128xf32>
    %25 = vector.extract_strided_slice %0 {offsets = [0, 2], sizes = [8, 1], strides = [1, 1]} : vector<8x8xi32> to vector<8x1xi32>
    %26 = vector.broadcast %25 : vector<8x1xi32> to vector<8x128xi32>
    %27 = arith.cmpi eq, %1, %26 : vector<8x128xi32>
    %cst_12 = arith.constant 1.000000e+00 : f32
    %cst_13 = arith.constant 0.000000e+00 : f32
    %28 = vector.broadcast %cst_12 : f32 to vector<8x128xf32>
    %29 = vector.broadcast %cst_13 : f32 to vector<8x128xf32>
    %30 = arith.select %27, %28, %29 : vector<8x128xi1>, vector<8x128xf32>
    %31 = arith.truncf %30 : vector<8x128xf32> to vector<8x128xbf16>
    %c2 = arith.constant 2 : index
    %c0_14 = arith.constant 0 : index
    %c0_15 = arith.constant 0 : index
    %32 = vector.load %arg2[%c2, %c0_14, %c0_15] : memref<8x128x128xbf16, #tpu.memory_space<vmem>>, vector<1x128x128xbf16>
    %33 = vector.shape_cast %32 : vector<1x128x128xbf16> to vector<128x128xbf16>
    %cst_16 = arith.constant dense<0.000000e+00> : vector<8x128xf32>
    %34 = tpu.matmul %31, %33, %cst_16 {dimension_numbers = #tpu.dot_dimension_numbers<[1], [0], [0], [1], [0, 0, 1, 1], [], []>} : vector<8x128xbf16>, vector<128x128xbf16>, vector<8x128xf32> -> vector<8x128xf32>
    %35 = arith.addf %24, %34 : vector<8x128xf32>
    %36 = vector.extract_strided_slice %0 {offsets = [0, 3], sizes = [8, 1], strides = [1, 1]} : vector<8x8xi32> to vector<8x1xi32>
    %37 = vector.broadcast %36 : vector<8x1xi32> to vector<8x128xi32>
    %38 = arith.cmpi eq, %1, %37 : vector<8x128xi32>
    %cst_17 = arith.constant 1.000000e+00 : f32
    %cst_18 = arith.constant 0.000000e+00 : f32
    %39 = vector.broadcast %cst_17 : f32 to vector<8x128xf32>
    %40 = vector.broadcast %cst_18 : f32 to vector<8x128xf32>
    %41 = arith.select %38, %39, %40 : vector<8x128xi1>, vector<8x128xf32>
    %42 = arith.truncf %41 : vector<8x128xf32> to vector<8x128xbf16>
    %c3 = arith.constant 3 : index
    %c0_19 = arith.constant 0 : index
    %c0_20 = arith.constant 0 : index
    %43 = vector.load %arg2[%c3, %c0_19, %c0_20] : memref<8x128x128xbf16, #tpu.memory_space<vmem>>, vector<1x128x128xbf16>
    %44 = vector.shape_cast %43 : vector<1x128x128xbf16> to vector<128x128xbf16>
    %cst_21 = arith.constant dense<0.000000e+00> : vector<8x128xf32>
    %45 = tpu.matmul %42, %44, %cst_21 {dimension_numbers = #tpu.dot_dimension_numbers<[1], [0], [0], [1], [0, 0, 1, 1], [], []>} : vector<8x128xbf16>, vector<128x128xbf16>, vector<8x128xf32> -> vector<8x128xf32>
    %46 = arith.addf %35, %45 : vector<8x128xf32>
    %47 = vector.extract_strided_slice %0 {offsets = [0, 4], sizes = [8, 1], strides = [1, 1]} : vector<8x8xi32> to vector<8x1xi32>
    %48 = vector.broadcast %47 : vector<8x1xi32> to vector<8x128xi32>
    %49 = arith.cmpi eq, %1, %48 : vector<8x128xi32>
    %cst_22 = arith.constant 1.000000e+00 : f32
    %cst_23 = arith.constant 0.000000e+00 : f32
    %50 = vector.broadcast %cst_22 : f32 to vector<8x128xf32>
    %51 = vector.broadcast %cst_23 : f32 to vector<8x128xf32>
    %52 = arith.select %49, %50, %51 : vector<8x128xi1>, vector<8x128xf32>
    %53 = arith.truncf %52 : vector<8x128xf32> to vector<8x128xbf16>
    %c4 = arith.constant 4 : index
    %c0_24 = arith.constant 0 : index
    %c0_25 = arith.constant 0 : index
    %54 = vector.load %arg2[%c4, %c0_24, %c0_25] : memref<8x128x128xbf16, #tpu.memory_space<vmem>>, vector<1x128x128xbf16>
    %55 = vector.shape_cast %54 : vector<1x128x128xbf16> to vector<128x128xbf16>
    %cst_26 = arith.constant dense<0.000000e+00> : vector<8x128xf32>
    %56 = tpu.matmul %53, %55, %cst_26 {dimension_numbers = #tpu.dot_dimension_numbers<[1], [0], [0], [1], [0, 0, 1, 1], [], []>} : vector<8x128xbf16>, vector<128x128xbf16>, vector<8x128xf32> -> vector<8x128xf32>
    %57 = arith.addf %46, %56 : vector<8x128xf32>
    %58 = vector.extract_strided_slice %0 {offsets = [0, 5], sizes = [8, 1], strides = [1, 1]} : vector<8x8xi32> to vector<8x1xi32>
    %59 = vector.broadcast %58 : vector<8x1xi32> to vector<8x128xi32>
    %60 = arith.cmpi eq, %1, %59 : vector<8x128xi32>
    %cst_27 = arith.constant 1.000000e+00 : f32
    %cst_28 = arith.constant 0.000000e+00 : f32
    %61 = vector.broadcast %cst_27 : f32 to vector<8x128xf32>
    %62 = vector.broadcast %cst_28 : f32 to vector<8x128xf32>
    %63 = arith.select %60, %61, %62 : vector<8x128xi1>, vector<8x128xf32>
    %64 = arith.truncf %63 : vector<8x128xf32> to vector<8x128xbf16>
    %c5 = arith.constant 5 : index
    %c0_29 = arith.constant 0 : index
    %c0_30 = arith.constant 0 : index
    %65 = vector.load %arg2[%c5, %c0_29, %c0_30] : memref<8x128x128xbf16, #tpu.memory_space<vmem>>, vector<1x128x128xbf16>
    %66 = vector.shape_cast %65 : vector<1x128x128xbf16> to vector<128x128xbf16>
    %cst_31 = arith.constant dense<0.000000e+00> : vector<8x128xf32>
    %67 = tpu.matmul %64, %66, %cst_31 {dimension_numbers = #tpu.dot_dimension_numbers<[1], [0], [0], [1], [0, 0, 1, 1], [], []>} : vector<8x128xbf16>, vector<128x128xbf16>, vector<8x128xf32> -> vector<8x128xf32>
    %68 = arith.addf %57, %67 : vector<8x128xf32>
    %69 = vector.extract_strided_slice %0 {offsets = [0, 6], sizes = [8, 1], strides = [1, 1]} : vector<8x8xi32> to vector<8x1xi32>
    %70 = vector.broadcast %69 : vector<8x1xi32> to vector<8x128xi32>
    %71 = arith.cmpi eq, %1, %70 : vector<8x128xi32>
    %cst_32 = arith.constant 1.000000e+00 : f32
    %cst_33 = arith.constant 0.000000e+00 : f32
    %72 = vector.broadcast %cst_32 : f32 to vector<8x128xf32>
    %73 = vector.broadcast %cst_33 : f32 to vector<8x128xf32>
    %74 = arith.select %71, %72, %73 : vector<8x128xi1>, vector<8x128xf32>
    %75 = arith.truncf %74 : vector<8x128xf32> to vector<8x128xbf16>
    %c6 = arith.constant 6 : index
    %c0_34 = arith.constant 0 : index
    %c0_35 = arith.constant 0 : index
    %76 = vector.load %arg2[%c6, %c0_34, %c0_35] : memref<8x128x128xbf16, #tpu.memory_space<vmem>>, vector<1x128x128xbf16>
    %77 = vector.shape_cast %76 : vector<1x128x128xbf16> to vector<128x128xbf16>
    %cst_36 = arith.constant dense<0.000000e+00> : vector<8x128xf32>
    %78 = tpu.matmul %75, %77, %cst_36 {dimension_numbers = #tpu.dot_dimension_numbers<[1], [0], [0], [1], [0, 0, 1, 1], [], []>} : vector<8x128xbf16>, vector<128x128xbf16>, vector<8x128xf32> -> vector<8x128xf32>
    %79 = arith.addf %68, %78 : vector<8x128xf32>
    %80 = vector.extract_strided_slice %0 {offsets = [0, 7], sizes = [8, 1], strides = [1, 1]} : vector<8x8xi32> to vector<8x1xi32>
    %81 = vector.broadcast %80 : vector<8x1xi32> to vector<8x128xi32>
    %82 = arith.cmpi eq, %1, %81 : vector<8x128xi32>
    %cst_37 = arith.constant 1.000000e+00 : f32
    %cst_38 = arith.constant 0.000000e+00 : f32
    %83 = vector.broadcast %cst_37 : f32 to vector<8x128xf32>
    %84 = vector.broadcast %cst_38 : f32 to vector<8x128xf32>
    %85 = arith.select %82, %83, %84 : vector<8x128xi1>, vector<8x128xf32>
    %86 = arith.truncf %85 : vector<8x128xf32> to vector<8x128xbf16>
    %c7 = arith.constant 7 : index
    %c0_39 = arith.constant 0 : index
    %c0_40 = arith.constant 0 : index
    %87 = vector.load %arg2[%c7, %c0_39, %c0_40] : memref<8x128x128xbf16, #tpu.memory_space<vmem>>, vector<1x128x128xbf16>
    %88 = vector.shape_cast %87 : vector<1x128x128xbf16> to vector<128x128xbf16>
    %cst_41 = arith.constant dense<0.000000e+00> : vector<8x128xf32>
    %89 = tpu.matmul %86, %88, %cst_41 {dimension_numbers = #tpu.dot_dimension_numbers<[1], [0], [0], [1], [0, 0, 1, 1], [], []>} : vector<8x128xbf16>, vector<128x128xbf16>, vector<8x128xf32> -> vector<8x128xf32>
    %90 = arith.addf %79, %89 : vector<8x128xf32>
    %c0_42 = arith.constant 0 : index
    %c0_43 = arith.constant 0 : index
    %91 = vector.load %arg3[%c0_42, %c0_43] : memref<1x128xf32, #tpu.memory_space<vmem>>, vector<1x128xf32>
    %92 = vector.broadcast %91 : vector<1x128xf32> to vector<8x128xf32>
    %93 = arith.addf %90, %92 : vector<8x128xf32>
    %cst_44 = arith.constant 0.000000e+00 : f32
    %94 = vector.broadcast %cst_44 : f32 to vector<8x128xf32>
    %95 = arith.maximumf %93, %94 : vector<8x128xf32>
    %96 = arith.truncf %95 : vector<8x128xf32> to vector<8x128xbf16>
    %c0_45 = arith.constant 0 : index
    %c0_46 = arith.constant 0 : index
    %97 = vector.load %arg4[%c0_45, %c0_46] : memref<128x256xbf16, #tpu.memory_space<vmem>>, vector<128x256xbf16>
    %cst_47 = arith.constant dense<0.000000e+00> : vector<8x256xf32>
    %98 = tpu.matmul %96, %97, %cst_47 {dimension_numbers = #tpu.dot_dimension_numbers<[1], [0], [0], [1], [0, 0, 1, 1], [], []>} : vector<8x128xbf16>, vector<128x256xbf16>, vector<8x256xf32> -> vector<8x256xf32>
    %c0_48 = arith.constant 0 : index
    %c0_49 = arith.constant 0 : index
    %99 = vector.load %arg5[%c0_48, %c0_49] : memref<1x256xf32, #tpu.memory_space<vmem>>, vector<1x256xf32>
    %100 = vector.broadcast %99 : vector<1x256xf32> to vector<8x256xf32>
    %101 = arith.addf %98, %100 : vector<8x256xf32>
    %cst_50 = arith.constant 0.000000e+00 : f32
    %102 = vector.broadcast %cst_50 : f32 to vector<8x256xf32>
    %103 = arith.maximumf %101, %102 : vector<8x256xf32>
    %104 = arith.truncf %103 : vector<8x256xf32> to vector<8x256xbf16>
    %c0_51 = arith.constant 0 : index
    %c0_52 = arith.constant 0 : index
    %105 = vector.load %arg6[%c0_51, %c0_52] : memref<256x128xbf16, #tpu.memory_space<vmem>>, vector<256x128xbf16>
    %cst_53 = arith.constant dense<0.000000e+00> : vector<8x128xf32>
    %106 = tpu.matmul %104, %105, %cst_53 {dimension_numbers = #tpu.dot_dimension_numbers<[1], [0], [0], [1], [0, 0, 1, 1], [], []>} : vector<8x256xbf16>, vector<256x128xbf16>, vector<8x128xf32> -> vector<8x128xf32>
    %c0_54 = arith.constant 0 : index
    %c0_55 = arith.constant 0 : index
    %107 = vector.load %arg7[%c0_54, %c0_55] : memref<1x128xf32, #tpu.memory_space<vmem>>, vector<1x128xf32>
    %108 = vector.broadcast %107 : vector<1x128xf32> to vector<8x128xf32>
    %109 = arith.addf %106, %108 : vector<8x128xf32>
    %cst_56 = arith.constant 0.000000e+00 : f32
    %110 = vector.broadcast %cst_56 : f32 to vector<8x128xf32>
    %111 = arith.maximumf %109, %110 : vector<8x128xf32>
    %112 = arith.truncf %111 : vector<8x128xf32> to vector<8x128xbf16>
    %c0_57 = arith.constant 0 : index
    %c0_58 = arith.constant 0 : index
    %113 = vector.load %arg8[%c0_57, %c0_58] : memref<128x128xbf16, #tpu.memory_space<vmem>>, vector<128x128xbf16>
    %cst_59 = arith.constant dense<0.000000e+00> : vector<8x128xf32>
    %114 = tpu.matmul %112, %113, %cst_59 {dimension_numbers = #tpu.dot_dimension_numbers<[1], [0], [0], [1], [0, 0, 1, 1], [], []>} : vector<8x128xbf16>, vector<128x128xbf16>, vector<8x128xf32> -> vector<8x128xf32>
    %c0_60 = arith.constant 0 : index
    %c0_61 = arith.constant 0 : index
    %115 = vector.load %arg9[%c0_60, %c0_61] : memref<1x128xf32, #tpu.memory_space<vmem>>, vector<1x128xf32>
    %116 = vector.broadcast %115 : vector<1x128xf32> to vector<8x128xf32>
    %117 = arith.addf %114, %116 : vector<8x128xf32>
    %c0_62 = arith.constant 0 : index
    %c0_63 = arith.constant 0 : index
    %118 = vector.load %arg10[%c0_62, %c0_63] : memref<8x128xf32, #tpu.memory_space<vmem>>, vector<8x128xf32>
    tpu.vector_store %arg10[%c0_62, %c0_63], %117 {strides = array<i32>} : memref<8x128xf32, #tpu.memory_space<vmem>>, vector<8x128xf32>,
    return
  }
  func.func @transform_0(%arg0: i32) -> (i32, i32) {
    %c0_i32 = arith.constant 0 : i32
    %c0_i32_0 = arith.constant 0 : i32
    return %arg0, %c0_i32 : i32, i32
  }
  func.func @transform_1(%arg0: i32) -> (i32, i32, i32) {
    %c0_i32 = arith.constant 0 : i32
    %c0_i32_0 = arith.constant 0 : i32
    %c0_i32_1 = arith.constant 0 : i32
    %c0_i32_2 = arith.constant 0 : i32
    return %c0_i32, %c0_i32_0, %c0_i32_1 : i32, i32, i32
  }
  func.func @transform_2(%arg0: i32) -> (i32, i32) {
    %c0_i32 = arith.constant 0 : i32
    %c0_i32_0 = arith.constant 0 : i32
    %c0_i32_1 = arith.constant 0 : i32
    return %c0_i32, %c0_i32_0 : i32, i32
  }
  func.func @transform_3(%arg0: i32) -> (i32, i32) {
    %c0_i32 = arith.constant 0 : i32
    %c0_i32_0 = arith.constant 0 : i32
    %c0_i32_1 = arith.constant 0 : i32
    return %c0_i32, %c0_i32_0 : i32, i32
  }
  func.func @transform_4(%arg0: i32) -> (i32, i32) {
    %c0_i32 = arith.constant 0 : i32
    %c0_i32_0 = arith.constant 0 : i32
    %c0_i32_1 = arith.constant 0 : i32
    return %c0_i32, %c0_i32_0 : i32, i32
  }
  func.func @transform_5(%arg0: i32) -> (i32, i32) {
    %c0_i32 = arith.constant 0 : i32
    %c0_i32_0 = arith.constant 0 : i32
    %c0_i32_1 = arith.constant 0 : i32
    return %c0_i32, %c0_i32_0 : i32, i32
  }
  func.func @transform_6(%arg0: i32) -> (i32, i32) {
    %c0_i32 = arith.constant 0 : i32
    %c0_i32_0 = arith.constant 0 : i32
    %c0_i32_1 = arith.constant 0 : i32
    return %c0_i32, %c0_i32_0 : i32, i32
  }
  func.func @transform_7(%arg0: i32) -> (i32, i32) {
    %c0_i32 = arith.constant 0 : i32
    %c0_i32_0 = arith.constant 0 : i32
    %c0_i32_1 = arith.constant 0 : i32
    return %c0_i32, %c0_i32_0 : i32, i32
  }
  func.func @transform_8(%arg0: i32) -> (i32, i32) {
    %c0_i32 = arith.constant 0 : i32
    %c0_i32_0 = arith.constant 0 : i32
    %c0_i32_1 = arith.constant 0 : i32
    return %c0_i32, %c0_i32_0 : i32, i32
  }
  func.func @transform_9(%arg0: i32) -> (i32, i32) {
    %c0_i32 = arith.constant 0 : i32
    %c0_i32_0 = arith.constant 0 : i32
    return %arg0, %c0_i32 : i32, i32
  }
}

</mosaic_0001>

<bundles_post_ra>
// kernel: mlp_forward.1
= control target key start
LH: loop header
LB: loop body
LE: loop exit
PB: predicated region body
PF: predicated region fallthrough
CT: control target
= control target key end

     0   :  { %14 = vsyncpa [#allocation3], 0  ;;  %s2346_s0 = inlined_call_operand.vmem [shape: s32[8,8], index: 0, kind: input, shape index: {}]   ;;  %s2347_s1 = inlined_call_operand.hbm [shape: bf16[8,128,128], index: 1, kind: input, shape index: {}]   ;;  %s2348_s2 = inlined_call_operand.vmem [shape: f32[1,128], index: 2, kind: input, shape index: {}]   ;;  %s2349_s3 = inlined_call_operand.hbm [shape: bf16[128,256], index: 3, kind: input, shape index: {}]   ;;  %s2350_s4 = inlined_call_operand.vmem [shape: f32[1,256], index: 4, kind: input, shape index: {}]   ;;  %s2351_s5 = inlined_call_operand.hbm [shape: bf16[256,128], index: 5, kind: input, shape index: {}]   ;;  %s2352_s6 = inlined_call_operand.vmem [shape: f32[1,128], index: 6, kind: input, shape index: {}]   ;;  %s2353_s7 = inlined_call_operand.hbm [shape: bf16[128,128], index: 7, kind: input, shape index: {}]   ;;  %s2354_s8 = inlined_call_operand.vmem [shape: f32[1,128], index: 8, kind: input, shape index: {}]   ;;  %s2355_s9 = inlined_call_operand.vmem [shape: f32[8,128], index: 9, kind: output, shape index: {}]  }
   0x1   :  { %15 = vsyncpa [#allocation5], 0 }
   0x2   :  { %16 = vsyncpa [#allocation8], 0  ;;  %s2083_s30 = smov [#allocation4]   ;;  %s1989_s13 = scalar_lea.hbm %s2349_s3, 2048 }
   0x3   :  { %s38_s10 = sshll.u32 %s2083_s30, 4  ;;  %p1990_p0 = scmp.ne.s32.totalorder %s2349_s3, %s1989_s13  ;;  %s39_s10 = int_to_ptr.vmem [resolvable:$true] %s38_s10 }
   0x4   :  { %p1993_p1 = scmp.lt.u32.totalorder %s1989_s13, %s2349_s3 }
   0x6   :  { %p1995_p2 = pnand %p1993_p1, %p1990_p0 }
   0x8   :  { %1998 = shalt.err (!%p1995_p2)
}
   0x9   :  { %s1999_s18 = scalar_lea.vmem %s39_s10, 2048  ;;  %p2004_p4 = scmp.lt.s32.totalorder %s39_s10, %s39_s10 }
   0xa   :  { %p2000_p3 = scmp.ne.s32.totalorder %s39_s10, %s1999_s18  ;;  %p2005_p5 = scmp.lt.s32.totalorder %s1999_s18, %s1999_s18 }
   0xc   :  { %p2006_p6 = por %p2005_p5, %p2004_p4 }
   0xe   :  { %p2007_p7 = pnand %p2006_p6, %p2000_p3 }
  0x10   :  { %2010 = shalt.err (!%p2007_p7)
}
  0x11   :  { %s2084_s19 = smov 128   ;;  %s2085_s20 = smov 8  }
  0x12   :  { %44 = dma.hbm_to_vmem [thread:$0]  %s2349_s3, 2048, %s39_s10, [#allocation5], %s2084_s19, %s2084_s19, %s2085_s20  }
  0x13   :  { %s2086_s23 = smov [#allocation2]   ;;  %s2011_s27 = scalar_lea.hbm %s2347_s1, 8192 }
  0x14   :  { %s24_s24 = sshll.u32 %s2086_s23, 4  ;;  %p2012_p8 = scmp.ne.s32.totalorder %s2347_s1, %s2011_s27  ;;  %s25_s24 = int_to_ptr.vmem [resolvable:$true] %s24_s24 }
  0x15   :  { %p2015_p9 = scmp.lt.u32.totalorder %s2011_s27, %s2347_s1 }
  0x17   :  { %p2017_p10 = pnand %p2015_p9, %p2012_p8 }
  0x19   :  { %2020 = shalt.err (!%p2017_p10)
}
  0x1a   :  { %s2021_s12 = scalar_lea.vmem %s25_s24, 8192  ;;  %p2026_p12 = scmp.lt.s32.totalorder %s25_s24, %s25_s24 }
  0x1b   :  { %p2022_p11 = scmp.ne.s32.totalorder %s25_s24, %s2021_s12  ;;  %p2027_p13 = scmp.lt.s32.totalorder %s2021_s12, %s2021_s12 }
  0x1d   :  { %p2028_p0 = por %p2027_p13, %p2026_p12 }
  0x1f   :  { %p2029_p1 = pnand %p2028_p0, %p2022_p11 }
  0x21   :  { %2032 = shalt.err (!%p2029_p1)
}
  0x22   :  { %s2087_s3 = smov 64   ;;  %s2088_s10 = smov 4  }
  0x23   :  { %30 = dma.hbm_to_vmem [thread:$0]  %s2347_s1, 8192, %s25_s24, [#allocation3], %s2087_s3, %s2087_s3, %s2088_s10  }
  0x24   :  { %s2089_s15 = smov [#allocation6]   ;;  %s2090_s17 = smov [#allocation7]  }
  0x25   :  { %s52_s16 = sshll.u32 %s2089_s15, 4  ;;  %s66_s18 = sshll.u32 %s2090_s17, 4  ;;  %s53_s16 = int_to_ptr.vmem [resolvable:$true] %s52_s16  ;;  %s2179_s18 = int_to_ptr.vmem [resolvable:$true] %s66_s18 }
  0x26   :  { %s2033_s21 = scalar_lea.hbm %s2351_s5, 2048 }
  0x27   :  { %p2034_p2 = scmp.ne.s32.totalorder %s2351_s5, %s2033_s21  ;;  %p2037_p3 = scmp.lt.u32.totalorder %s2033_s21, %s2351_s5 }
  0x29   :  { %p2039_p4 = pnand %p2037_p3, %p2034_p2 }
  0x2b   :  { %2042 = shalt.err (!%p2039_p4)
}
  0x2c   :  { %s2043_s1 = scalar_lea.vmem %s53_s16, 2048  ;;  %p2048_p6 = scmp.lt.s32.totalorder %s53_s16, %s53_s16 }
  0x2d   :  { %p2044_p5 = scmp.ne.s32.totalorder %s53_s16, %s2043_s1  ;;  %p2049_p7 = scmp.lt.s32.totalorder %s2043_s1, %s2043_s1 }
  0x2f   :  { %p2050_p8 = por %p2049_p7, %p2048_p6 }
  0x31   :  { %p2051_p9 = pnand %p2050_p8, %p2044_p5 }
  0x33   :  { %2054 = shalt.err (!%p2051_p9)
}
  0x34   :  { %58 = dma.hbm_to_vmem [thread:$0]  %s2351_s5, 2048, %s53_s16, [#allocation5], %s2087_s3, %s2087_s3, %s2088_s10  }
  0x35   :  { %s2055_s30 = scalar_lea.hbm %s2353_s7, 1024 }
  0x36   :  { %p2056_p10 = scmp.ne.s32.totalorder %s2353_s7, %s2055_s30  ;;  %p2059_p11 = scmp.lt.u32.totalorder %s2055_s30, %s2353_s7 }
  0x38   :  { %p2061_p12 = pnand %p2059_p11, %p2056_p10 }
  0x3a   :  { %2064 = shalt.err (!%p2061_p12)
}
  0x3b   :  { %s2065_s15 = scalar_lea.vmem %s2179_s18, 1024  ;;  %p2070_p0 = scmp.lt.s32.totalorder %s2179_s18, %s2179_s18 }
  0x3c   :  { %p2066_p13 = scmp.ne.s32.totalorder %s2179_s18, %s2065_s15  ;;  %p2071_p1 = scmp.lt.s32.totalorder %s2065_s15, %s2065_s15 }
  0x3e   :  { %p2072_p2 = por %p2071_p1, %p2070_p0 }
  0x40   :  { %p2073_p3 = pnand %p2072_p2, %p2066_p13 }
  0x42   :  { %2076 = shalt.err (!%p2073_p3)
}
  0x43   :  { %72 = dma.hbm_to_vmem [thread:$0]  %s2353_s7, 1024, %s2179_s18, [#allocation8], %s2087_s3, %s2087_s3, %s2088_s10  }
  0x44   :  { %2077 = dma.done.wait [#allocation3], 8192  }
  0x45   :  { %2078 = vsyncadd [#allocation3], 4294959104 }
  0x46   :  { %2079 = dma.done.wait [#allocation5], 4096  }
  0x47   :  { %2080 = vsyncadd [#allocation5], 4294963200 }
  0x48   :  { %2081 = dma.done.wait [#allocation8], 1024  }
  0x49   :  { %2082 = vsyncadd [#allocation8], 4294966272  ;;  %v2091_v0 = vmov 1   ;;  %v2092_v1 = vmov 2   ;;  %v2093_v2 = vmov 0.0   ;;  %v88_v3 = vld [vmem:[%s2346_s0] sm:$0xff]  ;;  %v89_v26 = vlaneseq }
  0x4a   :  { %1868 = vset.pattern.permute.xlu0 %v2091_v0  ;;  %1870 = vset.pattern.permute.xlu1 %v2092_v1  ;;  %v1877_v4 = vld [vmem:[#allocation2 + $0x40] sm:$0xff]   ;;  %v1878_v5 = vld [vmem:[#allocation2 + $0x48] sm:$0xff]   ;;  %vm2094_vm0 = vmmov 0   ;;  %v2095_v7 = vmov 0   ;;  %v2096_v8 = vmov 3   ;;  %v1880_v9 = vld [vmem:[#allocation2 + $0x50] sm:$0xff]  }
  0x4b   :  { %1669 = vmatprep.subr.bf16.mxu0 %v2093_v2  ;;  %1689 = vmatprep.subr.bf16.mxu1 %v2093_v2  ;;  %v1879_v6 = vld [vmem:[#allocation2] sm:$0xff]   ;;  %v1881_v10 = vld [vmem:[#allocation2 + $0x8] sm:$0xff]   ;;  %v2097_v11 = vmov 4   ;;  %v2098_v12 = vmov 5   ;;  %v1882_v13 = vld [vmem:[#allocation2 + $0x58] sm:$0xff]   ;;  %v2099_v15 = vmov 6  }
  0x4c   :  { %114 = vperm.xlu0 %1868, %v88_v3   ;;  %313 = vperm.xlu1 %1870, %v88_v3   ;;  %v1883_v14 = vld [vmem:[#allocation2 + $0x10] sm:$0xff]   ;;  %v1884_v16 = vld [vmem:[#allocation2 + $0x60] sm:$0xff]   ;;  %v2100_v17 = vmov 7   ;;  %v1885_v18 = vld [vmem:[#allocation2 + $0x18] sm:$0xff]   ;;  %v2243_v27 = vand.u32 127, %v89_v26 }
  0x4d   :  { %1685 = vmatprep.mubr.msk.bf16.mxu0 %vm2094_vm0, %v2093_v2  ;;  %1705 = vmatprep.mubr.msk.bf16.mxu1 %vm2094_vm0, %v2093_v2  ;;  %v1886_v19 = vld [vmem:[#allocation2 + $0x68] sm:$0xff]   ;;  %v1887_v20 = vld [vmem:[#allocation2 + $0x20] sm:$0xff]   ;;  %v1888_v21 = vld [vmem:[#allocation2 + $0x70] sm:$0xff]   ;;  %v2101_v30 = vmov 1.0|1.0  }
  0x4e   :  { %1670 = vmatpush3.bf16.msra.mxu0 %v1877_v4  ;;  %1690 = vmatpush3.bf16.msra.mxu1 %v1879_v6  ;;  %v1889_v22 = vld [vmem:[#allocation2 + $0x28] sm:$0xff]   ;;  %v1890_v23 = vld [vmem:[#allocation2 + $0x78] sm:$0xff]   ;;  %v1891_v24 = vld [vmem:[#allocation2 + $0x30] sm:$0xff]  }
  0x4f   :  { %1671 = vmatprep.subr.bf16.mxu0 %v2093_v2  ;;  %1691 = vmatprep.subr.bf16.mxu1 %v2093_v2  ;;  %v1893_v25 = vld [vmem:[#allocation2 + $0x38] sm:$0xff]   ;;  %v1892_v29 = vld [vmem:[#allocation2 + $0x80] sm:$0xff]   ;;  %v1894_v31 = vld [vmem:[#allocation2 + $0x88] sm:$0xff]  }
  0x50   :  { %1869 = vset.pattern.permute.xlu0 %v2095_v7  ;;  %1871 = vset.pattern.permute.xlu1 %v2096_v8  ;;  %v1895_v33 = vld [vmem:[#allocation2 + $0xc0] sm:$0xff]   ;;  %v1896_v34 = vld [vmem:[#allocation2 + $0x90] sm:$0xff]   ;;  %v1897_v35 = vld [vmem:[#allocation2 + $0xc8] sm:$0xff]  }
  0x51   :  { %92 = vperm.xlu0 %1869, %v88_v3   ;;  %425 = vperm.xlu1 %1871, %v88_v3   ;;  %v1898_v36 = vld [vmem:[#allocation2 + $0x98] sm:$0xff]   ;;  %v1899_v37 = vld [vmem:[#allocation2 + $0xd0] sm:$0xff]   ;;  %v1900_v38 = vld [vmem:[#allocation2 + $0xa0] sm:$0xff]  }
  0x52   :  { %1672 = vmatpush3.bf16.msra.mxu0 %v1878_v5  ;;  %1692 = vmatpush3.bf16.msra.mxu1 %v1881_v10  ;;  %v1901_v39 = vld [vmem:[#allocation2 + $0xd8] sm:$0xff]   ;;  %v1902_v40 = vld [vmem:[#allocation2 + $0xa8] sm:$0xff]   ;;  %v1903_v41 = vld [vmem:[#allocation2 + $0xe0] sm:$0xff]  }
  0x53   :  { %1673 = vmatprep.subr.bf16.mxu0 %v2093_v2  ;;  %1693 = vmatprep.subr.bf16.mxu1 %v2093_v2  ;;  %v1904_v42 = vld [vmem:[#allocation2 + $0xb0] sm:$0xff]   ;;  %v1905_v43 = vld [vmem:[#allocation2 + $0xe8] sm:$0xff]   ;;  %v1906_v45 = vld [vmem:[#allocation2 + $0xb8] sm:$0xff]  }
  0x54   :  { %v1907_v46 = vld [vmem:[#allocation2 + $0xf0] sm:$0xff]   ;;  %v1908_v48 = vld [vmem:[#allocation2 + $0x100] sm:$0xff]   ;;  %v1909_v49 = vld [vmem:[#allocation2 + $0xf8] sm:$0xff]  }
  0x55   :  { %1872 = vset.pattern.permute.xlu1 %v2097_v11  ;;  %1873 = vset.pattern.permute.xlu0 %v2098_v12  ;;  %v1910_v50 = vld [vmem:[#allocation2 + $0x108] sm:$0xff]   ;;  %v1911_v51 = vld [vmem:[#allocation2 + $0x140] sm:$0xff]   ;;  %v1912_v52 = vld [vmem:[#allocation2 + $0x110] sm:$0xff]  }
  0x56   :  { %537 = vperm.xlu1 %1872, %v88_v3   ;;  %649 = vperm.xlu0 %1873, %v88_v3   ;;  %v1913_v53 = vld [vmem:[#allocation2 + $0x148] sm:$0xff]   ;;  %v1914_v54 = vld [vmem:[#allocation2 + $0x118] sm:$0xff]   ;;  %v1915_v55 = vld [vmem:[#allocation2 + $0x150] sm:$0xff]  }
  0x57   :  { %1674 = vmatpush3.bf16.msra.mxu0 %v1880_v9  ;;  %1694 = vmatpush3.bf16.msra.mxu1 %v1883_v14  ;;  %v1916_v56 = vld [vmem:[#allocation2 + $0x120] sm:$0xff]   ;;  %v1917_v57 = vld [vmem:[#allocation2 + $0x158] sm:$0xff]   ;;  %v1918_v58 = vld [vmem:[#allocation2 + $0x128] sm:$0xff]  }
  0x58   :  { %1675 = vmatprep.subr.bf16.mxu0 %v2093_v2  ;;  %1695 = vmatprep.subr.bf16.mxu1 %v2093_v2  ;;  %v1919_v59 = vld [vmem:[#allocation2 + $0x160] sm:$0xff]   ;;  %v1920_v60 = vld [vmem:[#allocation2 + $0x130] sm:$0xff]   ;;  %v1921_v61 = vld [vmem:[#allocation2 + $0x168] sm:$0xff]  }
  0x59   :  { %v1922_v63 = vld [vmem:[#allocation2 + $0x138] sm:$0xff]   ;;  %v1923_v0 = vld [vmem:[#allocation2 + $0x170] sm:$0xff]   ;;  %v1926_v5 = vld [vmem:[#allocation2 + $0x188] sm:$0xff]  }
  0x5a   :  { %1874 = vset.pattern.permute.xlu1 %v2099_v15  ;;  %1876 = vset.pattern.permute.xlu0 %v2100_v17  ;;  %v1925_v4 = vld [vmem:[#allocation2 + $0x178] sm:$0xff]   ;;  %v1927_v6 = vld [vmem:[#allocation2 + $0x1c0] sm:$0xff]   ;;  %v1928_v8 = vld [vmem:[#allocation2 + $0x190] sm:$0xff]  }
  0x5b   :  { %761 = vperm.xlu1 %1874, %v88_v3   ;;  %1676 = vmatpush3.bf16.msra.mxu0 %v1882_v13  ;;  %v1929_v9 = vld [vmem:[#allocation2 + $0x1c8] sm:$0xff]   ;;  %v1930_v10 = vld [vmem:[#allocation2 + $0x198] sm:$0xff]   ;;  %v1931_v11 = vld [vmem:[#allocation2 + $0x1d0] sm:$0xff]  }
  0x5c   :  { %1677 = vmatprep.subr.bf16.mxu0 %v2093_v2  ;;  %1696 = vmatpush3.bf16.msra.mxu1 %v1885_v18  ;;  %v1932_v12 = vld [vmem:[#allocation2 + $0x1a0] sm:$0xff]   ;;  %v1933_v13 = vld [vmem:[#allocation2 + $0x1d8] sm:$0xff]   ;;  %v1934_v14 = vld [vmem:[#allocation2 + $0x1a8] sm:$0xff]  }
  0x5d   :  { %1697 = vmatprep.subr.bf16.mxu1 %v2093_v2  ;;  %v1935_v15 = vld [vmem:[#allocation2 + $0x1e0] sm:$0xff]  }
  0x5f   :  { %1875 = vset.pattern.permute.xlu1 %v2100_v17  ;;  %1678 = vmatpush3.bf16.msra.mxu0 %v1884_v16  ;;  %v1936_v16 = vld [vmem:[#allocation2 + $0x1b0] sm:$0xff]   ;;  %v1937_v17 = vld [vmem:[#allocation2 + $0x1e8] sm:$0xff]  }
  0x60   :  { %873 = vperm.xlu1 %1875, %v88_v3   ;;  %1679 = vmatprep.subr.bf16.mxu0 %v2093_v2  ;;  %v1924_v3 = vld [vmem:[#allocation2 + $0x180] sm:$0xff]  }
  0x61   :  { %1698 = vmatpush3.bf16.msra.mxu1 %v1887_v20  ;;  %v1939_v20 = vld [vmem:[#allocation2 + $0x1f0] sm:$0xff]  }
  0x62   :  { %1699 = vmatprep.subr.bf16.mxu1 %v2093_v2 }
  0x63   :  { %1680 = vmatpush3.bf16.msra.mxu0 %v1886_v19  ;;  %v1938_v19 = vld [vmem:[#allocation2 + $0x1b8] sm:$0xff]  }
  0x64   :  { %1681 = vmatprep.subr.bf16.mxu0 %v2093_v2 }
  0x65   :  { %1700 = vmatpush3.bf16.msra.mxu1 %v1889_v22  ;;  %v1940_v22 = vld [vmem:[#allocation2 + $0x1f8] sm:$0xff]  }
  0x66   :  { %1701 = vmatprep.subr.bf16.mxu1 %v2093_v2 }
  0x67   :  { %1682 = vmatpush3.bf16.msra.mxu0 %v1888_v21 }
  0x68   :  { %1683 = vmatprep.subr.bf16.mxu0 %v2093_v2 }
  0x69   :  { %1702 = vmatpush3.bf16.msra.mxu1 %v1891_v24  ;;  %v1943_v24 = vld [vmem:[#allocation4 + $0x4] ss:$8 sps:$4 sm:$0xff]  }
  0x6a   :  { %1703 = vmatprep.subr.bf16.mxu1 %v2093_v2 }
  0x6b   :  { %1684 = vmatpush3.bf16.msra.mxu0 %v1890_v23  ;;  %v1941_v23 = vld [vmem:[#allocation4] ss:$8 sps:$4 sm:$0xff]  }
  0x6c   :  { %1709 = vmatprep.subr.bf16.mxu0 %v2093_v2 }
  0x6d   :  { %1704 = vmatpush3.bf16.msra.mxu1 %v1893_v25  ;;  %v1946_v25 = vld [vmem:[#allocation4 + $0x14] ss:$8 sps:$4 sm:$0xff]  }
  0x6e   :  { %1729 = vmatprep.subr.bf16.mxu1 %v2093_v2 }
  0xcb   :  { %v115_v28 = vpop.permute.xlu0 %114  ;;  %v314_v44 = vpop.permute.xlu1 %313 }
  0xcc   :  { %vm116_vm1 = vcmp.eq.s32.totalorder %v2243_v27, %v115_v28  ;;  %vm315_vm5 = vcmp.eq.s32.totalorder %v2243_v27, %v314_v44  ;;  %v1944_v28 = vld [vmem:[#allocation4 + $0x10] ss:$8 sps:$4 sm:$0xff]  }
  0xcd   :  { %vm1451_vm2 = vmpackc.low %vm116_vm1, %vm116_vm1  ;;  %v1970_v44 = vld [vmem:[#allocation6 + $0x10] sm:$0xff]  }
  0xce   :  { %1686 = vmatmul.mubr.msk.bf16.vlgmr.msra.gmra.mrb[0].mxu0 %vm1451_vm2, %v2101_v30  ;;  %vm1471_vm6 = vmpackc.low %vm315_vm5, %vm315_vm5 }
  0xcf   :  { %1710 = vmatpush3.bf16.msra.mxu0 %v1892_v29  ;;  %1725 = vmatprep.mubr.msk.bf16.mxu0 %vm2094_vm0, %v2093_v2  ;;  %v1949_v29 = vld [vmem:[#allocation4 + $0x24] ss:$8 sps:$4 sm:$0xff]  }
  0xd0   :  { %v93_v32 = vpop.permute.xlu0 %92  ;;  %1711 = vmatprep.subr.bf16.mxu0 %v2093_v2  ;;  %v426_v47 = vpop.permute.xlu1 %425 }
  0xd1   :  { %vm94_vm3 = vcmp.eq.s32.totalorder %v2243_v27, %v93_v32  ;;  %vm427_vm7 = vcmp.eq.s32.totalorder %v2243_v27, %v426_v47  ;;  %v1950_v32 = vld [vmem:[#allocation4 + $0x30] ss:$8 sps:$4 sm:$0xff]   ;;  %v1973_v47 = vld [vmem:[#allocation6 + $0x60] sm:$0xff]  }
  0xd2   :  { %vm1461_vm4 = vmpackc.low %vm94_vm3, %vm94_vm3 }
  0xd3   :  { %1712 = vmatpush3.bf16.msra.mxu0 %v1894_v31  ;;  %1706 = vmatmul.mubr.msk.bf16.vlgmr.msra.gmra.mrb[0].mxu1 %vm1461_vm4, %v2101_v30  ;;  %vm1481_vm8 = vmpackc.low %vm427_vm7, %vm427_vm7  ;;  %v1947_v31 = vld [vmem:[#allocation4 + $0x20] ss:$8 sps:$4 sm:$0xff]  }
  0xd4   :  { %1730 = vmatpush3.bf16.msra.mxu1 %v1895_v33  ;;  %1713 = vmatprep.subr.bf16.mxu0 %v2093_v2  ;;  %v1953_v33 = vld [vmem:[#allocation4 + $0x40] ss:$8 sps:$4 sm:$0xff]  }
  0xd5   :  { %1731 = vmatprep.subr.bf16.mxu1 %v2093_v2  ;;  %1745 = vmatprep.mubr.msk.bf16.mxu1 %vm2094_vm0, %v2093_v2  ;;  %v538_v62 = vpop.permute.xlu1 %537  ;;  %v650_v1 = vpop.permute.xlu0 %649 }
  0xd6   :  { %vm539_vm9 = vcmp.eq.s32.totalorder %v2243_v27, %v538_v62  ;;  %vm651_vm11 = vcmp.eq.s32.totalorder %v2243_v27, %v650_v1 }
  0xd7   :  { %1714 = vmatpush3.bf16.msra.mxu0 %v1896_v34  ;;  %vm1491_vm10 = vmpackc.low %vm539_vm9, %vm539_vm9  ;;  %v1956_v34 = vld [vmem:[#allocation4 + $0x50] ss:$8 sps:$4 sm:$0xff]  }
  0xd8   :  { %1732 = vmatpush3.bf16.msra.mxu1 %v1897_v35  ;;  %1715 = vmatprep.subr.bf16.mxu0 %v2093_v2  ;;  %vm1501_vm12 = vmpackc.low %vm651_vm11, %vm651_vm11  ;;  %v1961_v35 = vld [vmem:[#allocation4 + $0x64] ss:$8 sps:$4 sm:$0xff]  }
  0xd9   :  { %1733 = vmatprep.subr.bf16.mxu1 %v2093_v2 }
  0xda   :  { %v762_v18 = vpop.permute.xlu1 %761 }
  0xdb   :  { %1716 = vmatpush3.bf16.msra.mxu0 %v1898_v36  ;;  %vm763_vm13 = vcmp.eq.s32.totalorder %v2243_v27, %v762_v18  ;;  %v1959_v36 = vld [vmem:[#allocation4 + $0x60] ss:$8 sps:$4 sm:$0xff]  }
  0xdc   :  { %1734 = vmatpush3.bf16.msra.mxu1 %v1899_v37  ;;  %1717 = vmatprep.subr.bf16.mxu0 %v2093_v2  ;;  %vm1511_vm14 = vmpackc.low %vm763_vm13, %vm763_vm13  ;;  %v1964_v37 = vld [vmem:[#allocation4 + $0x74] ss:$8 sps:$4 sm:$0xff]  }
  0xdd   :  { %1735 = vmatprep.subr.bf16.mxu1 %v2093_v2 }
  0xdf   :  { %1718 = vmatpush3.bf16.msra.mxu0 %v1900_v38  ;;  %v874_v21 = vpop.permute.xlu1 %873  ;;  %v1962_v38 = vld [vmem:[#allocation4 + $0x70] ss:$8 sps:$4 sm:$0xff]  }
  0xe0   :  { %1736 = vmatpush3.bf16.msra.mxu1 %v1901_v39  ;;  %1719 = vmatprep.subr.bf16.mxu0 %v2093_v2  ;;  %vm875_vm15 = vcmp.eq.s32.totalorder %v2243_v27, %v874_v21  ;;  %v1952_v27 = vld [vmem:[#allocation4 + $0x34] ss:$8 sps:$4 sm:$0xff]   ;;  %v1965_v39 = vld [vmem:[#allocation6 + $0x40] sm:$0xff]  }
  0xe1   :  { %1737 = vmatprep.subr.bf16.mxu1 %v2093_v2  ;;  %vm1521_vm1 = vmpackc.low %vm875_vm15, %vm875_vm15 }
  0xe3   :  { %1720 = vmatpush3.bf16.msra.mxu0 %v1902_v40  ;;  %v1966_v40 = vld [vmem:[#allocation6] sm:$0xff]  }
  0xe4   :  { %1738 = vmatpush3.bf16.msra.mxu1 %v1903_v41  ;;  %1721 = vmatprep.subr.bf16.mxu0 %v2093_v2  ;;  %v1967_v41 = vld [vmem:[#allocation6 + $0x48] sm:$0xff]  }
  0xe5   :  { %1739 = vmatprep.subr.bf16.mxu1 %v2093_v2 }
  0xe7   :  { %1722 = vmatpush3.bf16.msra.mxu0 %v1904_v42  ;;  %v1968_v42 = vld [vmem:[#allocation6 + $0x8] sm:$0xff]  }
  0xe8   :  { %1740 = vmatpush3.bf16.msra.mxu1 %v1905_v43  ;;  %1723 = vmatprep.subr.bf16.mxu0 %v2093_v2  ;;  %v1969_v43 = vld [vmem:[#allocation6 + $0x50] sm:$0xff]  }
  0xe9   :  { %1741 = vmatprep.subr.bf16.mxu1 %v2093_v2 }
  0xeb   :  { %1724 = vmatpush3.bf16.msra.mxu0 %v1906_v45  ;;  %v1971_v45 = vld [vmem:[#allocation6 + $0x58] sm:$0xff]  }
  0xec   :  { %1742 = vmatpush3.bf16.msra.mxu1 %v1907_v46  ;;  %1749 = vmatprep.subr.bf16.mxu0 %v2093_v2  ;;  %v1972_v46 = vld [vmem:[#allocation6 + $0x18] sm:$0xff]  }
  0xed   :  { %1743 = vmatprep.subr.bf16.mxu1 %v2093_v2 }
  0xee   :  { %1726 = vmatmul.mubr.msk.bf16.vlgmr.msra.gmra.mrb[4].mxu0 %vm1471_vm6, %v2101_v30 }
  0xef   :  { %1750 = vmatpush3.bf16.msra.mxu0 %v1908_v48  ;;  %1765 = vmatprep.mubr.msk.bf16.mxu0 %vm2094_vm0, %v2093_v2  ;;  %v1974_v48 = vld [vmem:[#allocation6 + $0x20] sm:$0xff]  }
  0xf0   :  { %1744 = vmatpush3.bf16.msra.mxu1 %v1909_v49  ;;  %1751 = vmatprep.subr.bf16.mxu0 %v2093_v2  ;;  %v1975_v49 = vld [vmem:[#allocation6 + $0x68] sm:$0xff]  }
  0xf1   :  { %1769 = vmatprep.subr.bf16.mxu1 %v2093_v2 }
  0xf3   :  { %1746 = vmatmul.mubr.msk.bf16.vlgmr.msra.gmra.mrb[4].mxu1 %vm1481_vm8, %v2101_v30  ;;  %1752 = vmatpush3.bf16.msra.mxu0 %v1910_v50 }
  0xf4   :  { %1770 = vmatpush3.bf16.msra.mxu1 %v1911_v51  ;;  %1753 = vmatprep.subr.bf16.mxu0 %v2093_v2 }
  0xf5   :  { %1771 = vmatprep.subr.bf16.mxu1 %v2093_v2  ;;  %1785 = vmatprep.mubr.msk.bf16.mxu1 %vm2094_vm0, %v2093_v2 }
  0xf7   :  { %1754 = vmatpush3.bf16.msra.mxu0 %v1912_v52  ;;  %v1976_v52 = vld [vmem:[#allocation6 + $0x28] sm:$0xff]  }
  0xf8   :  { %1772 = vmatpush3.bf16.msra.mxu1 %v1913_v53  ;;  %1755 = vmatprep.subr.bf16.mxu0 %v2093_v2 }
  0xf9   :  { %1773 = vmatprep.subr.bf16.mxu1 %v2093_v2 }
  0xfb   :  { %1756 = vmatpush3.bf16.msra.mxu0 %v1914_v54 }
  0xfc   :  { %1774 = vmatpush3.bf16.msra.mxu1 %v1915_v55  ;;  %1757 = vmatprep.subr.bf16.mxu0 %v2093_v2 }
  0xfd   :  { %1775 = vmatprep.subr.bf16.mxu1 %v2093_v2 }
  0xff   :  { %1758 = vmatpush3.bf16.msra.mxu0 %v1916_v56 }
 0x100   :  { %1776 = vmatpush3.bf16.msra.mxu1 %v1917_v57  ;;  %1759 = vmatprep.subr.bf16.mxu0 %v2093_v2 }
 0x101   :  { %1777 = vmatprep.subr.bf16.mxu1 %v2093_v2 }
 0x103   :  { %1760 = vmatpush3.bf16.msra.mxu0 %v1918_v58 }
 0x104   :  { %1778 = vmatpush3.bf16.msra.mxu1 %v1919_v59  ;;  %1761 = vmatprep.subr.bf16.mxu0 %v2093_v2 }
 0x105   :  { %1779 = vmatprep.subr.bf16.mxu1 %v2093_v2 }
 0x107   :  { %1762 = vmatpush3.bf16.msra.mxu0 %v1920_v60 }
 0x108   :  { %1780 = vmatpush3.bf16.msra.mxu1 %v1921_v61  ;;  %1763 = vmatprep.subr.bf16.mxu0 %v2093_v2 }
 0x109   :  { %1781 = vmatprep.subr.bf16.mxu1 %v2093_v2 }
 0x10b   :  { %1764 = vmatpush3.bf16.msra.mxu0 %v1922_v63 }
 0x10c   :  { %1782 = vmatpush3.bf16.msra.mxu1 %v1923_v0  ;;  %1789 = vmatprep.subr.bf16.mxu0 %v2093_v2 }
 0x10d   :  { %1783 = vmatprep.subr.bf16.mxu1 %v2093_v2 }
 0x10e   :  { %1766 = vmatmul.mubr.msk.bf16.vlgmr.msra.gmra.mrb[8].mxu0 %vm1491_vm10, %v2101_v30 }
 0x10f   :  { %1790 = vmatpush3.bf16.msra.mxu0 %v1924_v3  ;;  %1805 = vmatprep.mubr.msk.bf16.mxu0 %vm2094_vm0, %v2093_v2 }
 0x110   :  { %1784 = vmatpush3.bf16.msra.mxu1 %v1925_v4  ;;  %1791 = vmatprep.subr.bf16.mxu0 %v2093_v2 }
 0x111   :  { %1809 = vmatprep.subr.bf16.mxu1 %v2093_v2 }
 0x113   :  { %1786 = vmatmul.mubr.msk.bf16.vlgmr.msra.gmra.mrb[8].mxu1 %vm1501_vm12, %v2101_v30  ;;  %1792 = vmatpush3.bf16.msra.mxu0 %v1926_v5 }
 0x114   :  { %1810 = vmatpush3.bf16.msra.mxu1 %v1927_v6  ;;  %1793 = vmatprep.subr.bf16.mxu0 %v2093_v2 }
 0x115   :  { %1811 = vmatprep.subr.bf16.mxu1 %v2093_v2  ;;  %1825 = vmatprep.mubr.msk.bf16.mxu1 %vm2094_vm0, %v2093_v2 }
 0x117   :  { %1794 = vmatpush3.bf16.msra.mxu0 %v1928_v8 }
 0x118   :  { %1812 = vmatpush3.bf16.msra.mxu1 %v1929_v9  ;;  %1795 = vmatprep.subr.bf16.mxu0 %v2093_v2 }
 0x119   :  { %1813 = vmatprep.subr.bf16.mxu1 %v2093_v2 }
 0x11b   :  { %1796 = vmatpush3.bf16.msra.mxu0 %v1930_v10 }
 0x11c   :  { %1814 = vmatpush3.bf16.msra.mxu1 %v1931_v11  ;;  %1797 = vmatprep.subr.bf16.mxu0 %v2093_v2 }
 0x11d   :  { %1815 = vmatprep.subr.bf16.mxu1 %v2093_v2 }
 0x11f   :  { %1798 = vmatpush3.bf16.msra.mxu0 %v1932_v12 }
 0x120   :  { %1816 = vmatpush3.bf16.msra.mxu1 %v1933_v13  ;;  %1799 = vmatprep.subr.bf16.mxu0 %v2093_v2 }
 0x121   :  { %1817 = vmatprep.subr.bf16.mxu1 %v2093_v2 }
 0x123   :  { %1800 = vmatpush3.bf16.msra.mxu0 %v1934_v14 }
 0x124   :  { %1818 = vmatpush3.bf16.msra.mxu1 %v1935_v15  ;;  %1801 = vmatprep.subr.bf16.mxu0 %v2093_v2 }
 0x125   :  { %1819 = vmatprep.subr.bf16.mxu1 %v2093_v2 }
 0x127   :  { %1802 = vmatpush3.bf16.msra.mxu0 %v1936_v16 }
 0x128   :  { %1820 = vmatpush3.bf16.msra.mxu1 %v1937_v17  ;;  %1803 = vmatprep.subr.bf16.mxu0 %v2093_v2 }
 0x129   :  { %1821 = vmatprep.subr.bf16.mxu1 %v2093_v2 }
 0x12b   :  { %1804 = vmatpush3.bf16.msra.mxu0 %v1938_v19 }
 0x12c   :  { %1822 = vmatpush3.bf16.msra.mxu1 %v1939_v20  ;;  %1102 = vmatprep.subr.bf16.mxu0 %v1943_v24  ;;  %v1523_v24 = vld [vmem:[%s2348_s2] ss:$0 sm:$0xff] }
 0x12d   :  { %1823 = vmatprep.subr.bf16.mxu1 %v2093_v2 }
 0x12e   :  { %1806 = vmatmul.mubr.msk.bf16.vlgmr.msra.gmra.mrb[12].mxu0 %vm1511_vm14, %v2101_v30 }
 0x12f   :  { %1134 = vmatprep.mubr.bf16.mxu0 %v2095_v7  ;;  %1103 = vmatpush1.bf16.msra.mxu0 %v1941_v23  ;;  %v1955_v7 = vld [vmem:[#allocation4 + $0x44] ss:$8 sps:$4 sm:$0xff]  }
 0x130   :  { %1824 = vmatpush3.bf16.msra.mxu1 %v1940_v22  ;;  %1104 = vmatprep.subr.bf16.mxu0 %v1946_v25 }
 0x131   :  { %1638 = vmatprep.subr.bf16.mxu1 %v1965_v39  ;;  %v1984_v39 = vld [vmem:[#allocation7 + $0x18] sm:$0xff]  }
 0x133   :  { %1826 = vmatmul.mubr.msk.bf16.vlgmr.msra.gmra.mrb[12].mxu1 %vm1521_vm1, %v2101_v30  ;;  %1105 = vmatpush1.bf16.msra.mxu0 %v1944_v28  ;;  %v1958_v30 = vld [vmem:[#allocation4 + $0x54] ss:$8 sps:$4 sm:$0xff]  }
 0x134   :  { %1106 = vmatprep.subr.bf16.mxu0 %v1949_v29  ;;  %1639 = vmatpush3.bf16.msra.mxu1 %v1966_v40  ;;  %v1985_v40 = vld [vmem:[#allocation7 + $0x20] sm:$0xff]  }
 0x135   :  { %1640 = vmatprep.subr.bf16.mxu1 %v1967_v41  ;;  %v1986_v41 = vld [vmem:[#allocation7 + $0x28] sm:$0xff]  }
 0x137   :  { %1107 = vmatpush1.bf16.msra.mxu0 %v1947_v31 }
 0x138   :  { %1108 = vmatprep.subr.bf16.mxu0 %v1952_v27  ;;  %1641 = vmatpush3.bf16.msra.mxu1 %v1968_v42  ;;  %v1013_v42 = vshrl.u32 %v89_v26, 7  ;;  %v1987_v26 = vld [vmem:[#allocation7 + $0x30] sm:$0xff]  }
 0x139   :  { %1642 = vmatprep.subr.bf16.mxu1 %v1969_v43 }
 0x13a   :  { %v1014_v43 = vsub.s32 0, %v1013_v42 }
 0x13b   :  { %1109 = vmatpush1.bf16.msra.mxu0 %v1950_v32 }
 0x13c   :  { %1110 = vmatprep.subr.bf16.mxu0 %v1955_v7  ;;  %1643 = vmatpush3.bf16.msra.mxu1 %v1970_v44  ;;  %v1010_v44 = vld [vmem:[%s2350_s4] sm:$0x3] }
 0x13d   :  { %1644 = vmatprep.subr.bf16.mxu1 %v1971_v45  ;;  %v1018_v45 = vsub.s32 1, %v1013_v42 }
 0x13f   :  { %1111 = vmatpush1.bf16.msra.mxu0 %v1953_v33  ;;  %v1977_v33 = vld [vmem:[#allocation6 + $0x70] sm:$0xff]  }
 0x140   :  { %1112 = vmatprep.subr.bf16.mxu0 %v1958_v30  ;;  %1645 = vmatpush3.bf16.msra.mxu1 %v1972_v46  ;;  %v1978_v30 = vld [vmem:[#allocation6 + $0x30] sm:$0xff]   ;;  %v1015_v46 = vrot.slane %v1010_v44, %v1014_v43 }
 0x141   :  { %1646 = vmatprep.subr.bf16.mxu1 %v1973_v47  ;;  %v1019_v47 = vrot.slane %v1010_v44, %v1018_v45 }
 0x143   :  { %1113 = vmatpush1.bf16.msra.mxu0 %v1956_v34  ;;  %v1979_v34 = vld [vmem:[#allocation6 + $0x78] sm:$0xff]  }
 0x144   :  { %1114 = vmatprep.subr.bf16.mxu0 %v1961_v35  ;;  %1647 = vmatpush3.bf16.msra.mxu1 %v1974_v48  ;;  %v1980_v35 = vld [vmem:[#allocation6 + $0x38] sm:$0xff]  }
 0x145   :  { %1648 = vmatprep.subr.bf16.mxu1 %v1975_v49 }
 0x147   :  { %1115 = vmatpush1.bf16.msra.mxu0 %v1959_v36  ;;  %v1981_v36 = vld [vmem:[#allocation7] sm:$0xff]  }
 0x148   :  { %1116 = vmatprep.subr.bf16.mxu0 %v1964_v37  ;;  %1649 = vmatpush3.bf16.msra.mxu1 %v1976_v52  ;;  %v1982_v37 = vld [vmem:[#allocation7 + $0x8] sm:$0xff]  }
 0x149   :  { %1650 = vmatprep.subr.bf16.mxu1 %v1977_v33 }
 0x14b   :  { %1117 = vmatpush1.bf16.msra.mxu0 %v1962_v38  ;;  %v1983_v38 = vld [vmem:[#allocation7 + $0x10] sm:$0xff]  }
 0x14c   :  { %1829 = vmatprep.subr.bf16.mxu0 %v2093_v2  ;;  %1651 = vmatpush3.bf16.msra.mxu1 %v1978_v30 }
 0x14d   :  { %1652 = vmatprep.subr.bf16.mxu1 %v1979_v34 }
 0x150   :  { %1653 = vmatpush3.bf16.msra.mxu1 %v1980_v35 }
 0x1a1   :  { %v218_v50 = vpop.f32.mrb[0].mxu0 }
 0x1a2   :  { %v1687_v51 = vpop.f32.mrb[1].mxu0 }
 0x1a3   :  { %v221_v53 = vpop.f32.mrb[2].mxu0 }
 0x1a4   :  { %v1688_v54 = vpop.f32.mrb[3].mxu0 }
 0x1a6   :  { %v306_v55 = vpop.f32.mrb[0].mxu1 }
 0x1a7   :  { %v307_v56 = vadd.f32 %v306_v55, %v218_v50  ;;  %v1707_v57 = vpop.f32.mrb[1].mxu1 }
 0x1a8   :  { %v309_v58 = vpop.f32.mrb[2].mxu1 }
 0x1a9   :  { %v1708_v59 = vpop.f32.mrb[3].mxu1  ;;  %v1988_v58 = vld [vmem:[#allocation7 + $0x38] sm:$0xff]  }
 0x1c1   :  { %v417_v60 = vpop.f32.mrb[4].mxu0 }
 0x1c2   :  { %v423_v61 = vadd.f32 %v417_v60, %v307_v56  ;;  %v1727_v62 = vpop.f32.mrb[5].mxu0  ;;  %v1540_v60 = vld [vmem:[%s2352_s6] ss:$0 sm:$0xff] }
 0x1c3   :  { %v420_v63 = vpop.f32.mrb[6].mxu0 }
 0x1c4   :  { %v1728_v0 = vpop.f32.mrb[7].mxu0 }
 0x1c6   :  { %v529_v1 = vpop.f32.mrb[4].mxu1 }
 0x1c7   :  { %v535_v3 = vadd.f32 %v529_v1, %v423_v61  ;;  %v1747_v4 = vpop.f32.mrb[5].mxu1 }
 0x1c8   :  { %v532_v5 = vpop.f32.mrb[6].mxu1 }
 0x1c9   :  { %v1748_v6 = vpop.f32.mrb[7].mxu1  ;;  %v1557_v5 = vld [vmem:[%s2354_s8] ss:$0 sm:$0xff] }
 0x1e1   :  { %v641_v8 = vpop.f32.mrb[8].mxu0 }
 0x1e2   :  { %v647_v9 = vadd.f32 %v641_v8, %v535_v3  ;;  %v1767_v10 = vpop.f32.mrb[9].mxu0 }
 0x1e3   :  { %v644_v11 = vpop.f32.mrb[10].mxu0 }
 0x1e4   :  { %v1768_v12 = vpop.f32.mrb[11].mxu0 }
 0x1e6   :  { %v753_v13 = vpop.f32.mrb[8].mxu1 }
 0x1e7   :  { %v759_v14 = vadd.f32 %v753_v13, %v647_v9  ;;  %v1787_v15 = vpop.f32.mrb[9].mxu1 }
 0x1e8   :  { %v756_v16 = vpop.f32.mrb[10].mxu1 }
 0x1e9   :  { %v1788_v17 = vpop.f32.mrb[11].mxu1 }
 0x201   :  { %v865_v18 = vpop.f32.mrb[12].mxu0 }
 0x202   :  { %v871_v19 = vadd.f32 %v865_v18, %v759_v14  ;;  %v1807_v20 = vpop.f32.mrb[13].mxu0 }
 0x203   :  { %v868_v21 = vpop.f32.mrb[14].mxu0 }
 0x204   :  { %v1808_v22 = vpop.f32.mrb[15].mxu0 }
 0x206   :  { %v977_v23 = vpop.f32.mrb[12].mxu1 }
 0x207   :  { %v983_v25 = vadd.f32 %v977_v23, %v871_v19  ;;  %v1827_v28 = vpop.f32.mrb[13].mxu1 }
 0x208   :  { %v980_v29 = vpop.f32.mrb[14].mxu1 }
 0x209   :  { %v991_v31 = vadd.f32 %v1523_v24, %v983_v25  ;;  %v1828_v27 = vpop.f32.mrb[15].mxu1 }
 0x20b   :  { %v992_v32 = vmax.f32 %v991_v31, 0.0 }
 0x20d   :  { %v993_v7 = vpack.c.bf16 %v992_v32, %v992_v32 }
 0x20f   :  { %1135 = vmatmul.mubr.bf16.vlgmr.msra.gmra.mrb[16].mxu0 %v993_v7 }
 0x210   :  { %1845 = vmatprep.mubr.msk.bf16.mxu0 %vm2094_vm0, %v2093_v2  ;;  %1830 = vmatpush3.bf16.msra.mxu0 %v1981_v36 }
 0x211   :  { %1831 = vmatprep.subr.bf16.mxu0 %v2093_v2 }
 0x214   :  { %1832 = vmatpush3.bf16.msra.mxu0 %v1982_v37 }
 0x215   :  { %1833 = vmatprep.subr.bf16.mxu0 %v2093_v2 }
 0x218   :  { %1834 = vmatpush3.bf16.msra.mxu0 %v1983_v38 }
 0x219   :  { %1835 = vmatprep.subr.bf16.mxu0 %v2093_v2 }
 0x21c   :  { %1836 = vmatpush3.bf16.msra.mxu0 %v1984_v39 }
 0x21d   :  { %1837 = vmatprep.subr.bf16.mxu0 %v2093_v2 }
 0x220   :  { %1838 = vmatpush3.bf16.msra.mxu0 %v1985_v40 }
 0x221   :  { %1839 = vmatprep.subr.bf16.mxu0 %v2093_v2 }
 0x224   :  { %1840 = vmatpush3.bf16.msra.mxu0 %v1986_v41 }
 0x225   :  { %1841 = vmatprep.subr.bf16.mxu0 %v2093_v2 }
 0x228   :  { %1842 = vmatpush3.bf16.msra.mxu0 %v1987_v26 }
 0x229   :  { %1843 = vmatprep.subr.bf16.mxu0 %v2093_v2 }
 0x22c   :  { %1844 = vmatpush3.bf16.msra.mxu0 %v1988_v58 }
 0x2e2   :  { %v1136_v48 = vpop.f32.mrb[16].mxu0 }
 0x2e3   :  { %v1137_v49 = vadd.f32 %v1136_v48, %v1015_v46  ;;  %v1138_v50 = vpop.f32.mrb[17].mxu0 }
 0x2e4   :  { %v1139_v51 = vadd.f32 %v1138_v50, %v1019_v47  ;;  %v1140_v52 = vpop.f32.mrb[18].mxu0 }
 0x2e5   :  { %v1143_v53 = vmax.f32 %v1137_v49, 0.0  ;;  %v1141_v54 = vpop.f32.mrb[19].mxu0 }
 0x2e6   :  { %v1144_v55 = vmax.f32 %v1139_v51, 0.0 }
 0x2e7   :  { %v1145_v57 = vpack.c.bf16 %v1143_v53, %v1143_v53 }
 0x2e8   :  { %v1146_v56 = vpack.c.bf16 %v1144_v55, %v1144_v55 }
 0x2ea   :  { %1314 = vmatprep.mubr.bf16.mxu1 %v1146_v56 }
 0x2eb   :  { %1315 = vmatmul.mubr.bf16.vlgmr.msra.gmra.mrb[16].mxu1 %v1145_v57 }
 0x3be   :  { %v1654_v59 = vpop.f32.mrb[16].mxu1 }
 0x3bf   :  { %v1655_v61 = vpop.f32.mrb[17].mxu1 }
 0x3c0   :  { %v1656_v62 = vadd.f32 %v1655_v61, %v1654_v59  ;;  %v1657_v63 = vpop.f32.mrb[18].mxu1 }
 0x3c1   :  { %v1658_v0 = vpop.f32.mrb[19].mxu1 }
 0x3c2   :  { %v1317_v1 = vadd.f32 %v1656_v62, %v1540_v60 }
 0x3c4   :  { %v1322_v3 = vmax.f32 %v1317_v1, 0.0 }
 0x3c6   :  { %v1323_v4 = vpack.c.bf16 %v1322_v3, %v1322_v3 }
 0x3c8   :  { %1846 = vmatmul.mubr.bf16.vlgmr.msra.gmra.mrb[20].mxu0 %v1323_v4 }
 0x49b   :  { %v1429_v2 = vpop.f32.mrb[20].mxu0 }
 0x49c   :  { %v1430_v6 = vadd.f32 %v1557_v5, %v1429_v2  ;;  %v1847_v8 = vpop.f32.mrb[21].mxu0 }
 0x49d   :  { %v1432_v9 = vpop.f32.mrb[22].mxu0 }
 0x49e   :  { %1435 = vst [vmem:[%s2355_s9] sm:$0xff] %v1430_v6  ;;  %v1848_v10 = vpop.f32.mrb[23].mxu0 }
 0x49f   :  { %1440 = vsyncpa [#allocation3], 1 }
 0x4a0   :  { %1441 = vsyncpa [#allocation5], 1 }
 0x4a1   :  { %1442 = vsyncpa [#allocation8], 1 }

</bundles_post_ra>
